<compile_context>
chip_gen: v7x
topology: tpu7x:2x2x1
jax: 0.10.0
libtpu: 0.0.40
codegen_flags: <defaults>
</compile_context>

<pallas_src>
import functools

import jax
import jax.numpy as jnp
from jax.experimental import pallas as pl
from jax.experimental.pallas import tpu as pltpu


# ----------------------------------------------------------------------------
# Pallas kernel: fused 2-layer MLP head + narrow (pi|v) head
# ----------------------------------------------------------------------------
def _pvz_ff_kernel(x_ref, w1_ref, b1_ref, w2_ref, b2_ref, wh_ref, bh_ref,
                   out_ref, *, output_size):
    w_dtype = w1_ref.dtype

    def fc(a, w_ref, b_ref):
        # Matmul in the weights' dtype (bf16 -> native bf16 MXU path),
        # f32 accumulation via preferred_element_type.
        return (jnp.dot(a.astype(w_dtype), w_ref[...],
                        preferred_element_type=jnp.float32)
                + b_ref[...].astype(jnp.float32))

    h1 = jnp.maximum(fc(x_ref[...], w1_ref, b1_ref), 0.0)      # (TM, H1) f32
    h2 = jnp.maximum(fc(h1, w2_ref, b2_ref), 0.0)               # (TM, H2) f32

    # Fused policy+value head: raw[:, :A] = pi logits, raw[:, A] = v,
    # raw[:, A+1:] = 0 (zero-padded weight columns / bias lanes).
    raw = fc(h2, wh_ref, bh_ref)                                # (TM, 8) f32

    lane = jax.lax.broadcasted_iota(jnp.int32, raw.shape, 1)
    is_pi = lane < output_size

    # Numerically stable softmax over the pi lanes only.
    logits = jnp.where(is_pi, raw, -jnp.inf)
    m = jnp.max(logits, axis=-1, keepdims=True)
    e = jnp.exp(logits - m)                                     # masked -> 0
    denom = jnp.sum(e, axis=-1, keepdims=True)
    pi = e / denom          # exact divide: rows sum to 1 (compute not binding)

    # pi lanes hold softmax; lane A holds v; remaining lanes hold zeros.
    out_ref[...] = jnp.where(is_pi, pi, raw)


# ----------------------------------------------------------------------------
# One-time parameter fusion: [Wpi | Wv | 0] head, done at param setup
# ----------------------------------------------------------------------------
def fuse_head_params(params):
    """(w1,b1,w2,b2,wpi,bpi,wv,bv) -> (w1,b1,w2,b2,wh,bh,output_size)."""
    w1, b1, w2, b2, wpi, bpi, wv, bv = params
    hidden = w2.shape[1]
    output_size = wpi.shape[1]
    # Narrow head: pi lanes + 1 value lane, rounded up to a multiple of 8.
    head_w = ((output_size + 1 + 7) // 8) * 8
    wh = jnp.zeros((hidden, head_w), w1.dtype)
    wh = wh.at[:, :output_size].set(wpi.astype(w1.dtype))
    wh = wh.at[:, output_size:output_size + 1].set(wv.astype(w1.dtype))
    bh = jnp.zeros((1, head_w), jnp.float32)
    bh = bh.at[:, :output_size].set(
        bpi.astype(jnp.float32).reshape(1, output_size))
    bh = bh.at[:, output_size:output_size + 1].set(
        bv.astype(jnp.float32).reshape(1, 1))
    return (w1, b1, w2, b2, wh, bh, output_size)


def cast_weights(params, dtype):
    """Cast weight matrices (not biases) to `dtype` (e.g. bf16 for v5e)."""
    w1, b1, w2, b2, wpi, bpi, wv, bv = params
    return (w1.astype(dtype), b1, w2.astype(dtype), b2,
            wpi.astype(dtype), bpi, wv.astype(dtype), bv)


# ----------------------------------------------------------------------------
# Wrapper: leading-dim handling, grid / BlockSpecs
# ----------------------------------------------------------------------------
def pvz_ff_forward(fused_params, in_state, prev_action=None, prev_reward=None,
                   *, row_tile=1024):
    """pvzFfModel forward.  in_state: [..., input_size]. Returns (pi, v)."""
    del prev_action, prev_reward  # unused by the model, kept for API parity
    w1, b1, w2, b2, wh, bh, output_size = fused_params
    input_size = w1.shape[0]
    head_w = wh.shape[1]

    lead_shape = in_state.shape[:-1]
    x = in_state.reshape((-1, input_size))        # keep original dtype
    n = x.shape[0]

    # Row tile: multiple of 8, never larger than the row count.  For n >= 16
    # the tile is capped so the grid has >= 2 steps (feeds both v7x TCs via
    # the "parallel" dimension semantics).  Partial final blocks are handled
    # by Pallas masked writes (no wrapper-side padding copy of x).
    if n < 8:
        tile = max(n, 1)
    else:
        tile = min(row_tile, (n // 8) * 8)
        if n >= 16:
            tile = min(tile, 8 * ((n + 15) // 16))   # ceil(n/2) rounded to 8
    grid = (pl.cdiv(n, tile),)

    def row_spec(cols):
        return pl.BlockSpec((tile, cols), lambda i: (i, 0))

    def full_spec(shape):
        return pl.BlockSpec(shape, lambda i: (0, 0))

    out = pl.pallas_call(
        functools.partial(_pvz_ff_kernel, output_size=output_size),
        out_shape=jax.ShapeDtypeStruct((n, head_w), jnp.float32),
        grid_spec=pltpu.PrefetchScalarGridSpec(
            num_scalar_prefetch=0,
            grid=grid,
            in_specs=[
                row_spec(input_size),      # x tile (streamed)
                full_spec(w1.shape),       # W1 (resident)
                full_spec(b1.shape),       # b1
                full_spec(w2.shape),       # W2
                full_spec(b2.shape),       # b2
                full_spec(wh.shape),       # fused [Wpi|Wv|0] (8 cols)
                full_spec(bh.shape),       # fused [bpi|bv|0]
            ],
            out_specs=row_spec(head_w),    # narrow (tile, 8) f32 output block
        ),
        compiler_params=pltpu.CompilerParams(
            dimension_semantics=("parallel",)),
    )(x, w1, b1, w2, b2, wh, bh)

    pi = out[:, :output_size].reshape(lead_shape + (output_size,))
    v = out[:, output_size].reshape(lead_shape)
    return pi, v


# ----------------------------------------------------------------------------
# Deterministic parameter init (xavier-normal weights, zero biases)
# ----------------------------------------------------------------------------
def init_params(key, input_size, fc_sizes, output_size, dtype=jnp.float32):
    def xavier_normal(k, fan_in, fan_out):
        std = jnp.sqrt(2.0 / (fan_in + fan_out))
        return (std * jax.random.normal(k, (fan_in, fan_out),
                                        dtype=jnp.float32)).astype(dtype)

    k1, k2, k3, k4 = jax.random.split(key, 4)
    h1, h2 = fc_sizes
    w1 = xavier_normal(k1, input_size, h1)
    b1 = jnp.zeros((1, h1), jnp.float32)
    w2 = xavier_normal(k2, h1, h2)
    b2 = jnp.zeros((1, h2), jnp.float32)
    wpi = xavier_normal(k3, h2, output_size)
    bpi = jnp.zeros((1, output_size), jnp.float32)
    wv = xavier_normal(k4, h2, 1)
    bv = jnp.zeros((1, 1), jnp.float32)
    return (w1, b1, w2, b2, wpi, bpi, wv, bv)


# ----------------------------------------------------------------------------
# Pure-JAX reference for correctness checks
# ----------------------------------------------------------------------------
def pvz_ff_reference(params, in_state):
    w1, b1, w2, b2, wpi, bpi, wv, bv = params
    x = in_state.astype(jnp.float32)
    lead_shape = x.shape[:-1]
    x = x.reshape((-1, w1.shape[0]))
    h1 = jnp.maximum(x @ w1.astype(jnp.float32) + b1, 0.0)
    h2 = jnp.maximum(h1 @ w2.astype(jnp.float32) + b2, 0.0)
    pi = jax.nn.softmax(h2 @ wpi.astype(jnp.float32) + bpi, axis=-1)
    v = (h2 @ wv.astype(jnp.float32) + bv)[:, 0]
    return pi.reshape(lead_shape + (wpi.shape[1],)), v.reshape(lead_shape)


def _check(raw_params, fused_params, x, *, row_tile=1024,
           pi_atol=2e-3, v_atol=1e-4, sum_atol=1e-3):
    pi, v = pvz_ff_forward(fused_params, x, row_tile=row_tile)
    pi = jax.block_until_ready(pi)
    v = jax.block_until_ready(v)
    pi_ref, v_ref = pvz_ff_reference(raw_params, x)
    lead = x.shape[:-1]
    assert pi.shape == lead + (pi_ref.shape[-1],), (pi.shape, lead)
    assert v.shape == lead, (v.shape, lead)
    assert jnp.allclose(pi, pi_ref, atol=pi_atol), "pi mismatch"
    assert jnp.allclose(v, v_ref, atol=v_atol), "v mismatch"
    assert jnp.allclose(jnp.sum(pi, axis=-1), 1.0, atol=sum_atol), "softmax sum"


if __name__ == "__main__":
    key = jax.random.PRNGKey(0)
    kp, kx1, kx2, kx3, kx4 = jax.random.split(key, 5)

    # image_shape=(32,) -> input_size=32, output_size=6, fc_sizes=[64, 64]
    input_size, output_size = 32, 6
    fc_sizes = [64, 64]
    params = init_params(kp, input_size, fc_sizes, output_size)
    fused = fuse_head_params(params)                    # built once, reused

    # Test 1: [T, B] leading dims, single tile.
    x1 = jax.random.normal(kx1, (2, 4, input_size), dtype=jnp.float32)
    _check(params, fused, x1)

    # Test 2: [B] leading dim, B=300 -> 2 grid steps (partial final block
    # handled by masked writes, no wrapper pad).
    x2 = jax.random.normal(kx2, (300, input_size), dtype=jnp.float32)
    _check(params, fused, x2, row_tile=1024)

    # Test 3: [] leading dims (single state vector).
    x3 = jax.random.normal(kx3, (input_size,), dtype=jnp.float32)
    _check(params, fused, x3)

    # Test 4: bf16 weight path (v5e MXU / halved weight+x DMA), f32 accumulate.
    fused_bf16 = fuse_head_params(cast_weights(params, jnp.bfloat16))
    x4 = jax.random.normal(kx4, (5, 7, input_size), dtype=jnp.float32)
    _check(params, fused_bf16, x4, pi_atol=3e-2, v_atol=1e-1)

    print("KERNEL_OK")
</pallas_src>

<mosaic_0001>
module attributes {stable_mosaic.version = 11 : i64} {
  func.func @_pvz_ff_kernel(%arg0: i32, %arg1: memref<8x32xf32, #tpu.memory_space<vmem>>, %arg2: memref<32x64xf32, #tpu.memory_space<vmem>>, %arg3: memref<1x64xf32, #tpu.memory_space<vmem>>, %arg4: memref<64x64xf32, #tpu.memory_space<vmem>>, %arg5: memref<1x64xf32, #tpu.memory_space<vmem>>, %arg6: memref<64x8xf32, #tpu.memory_space<vmem>>, %arg7: memref<1x8xf32, #tpu.memory_space<vmem>>, %arg8: memref<8x8xf32, #tpu.memory_space<vmem>>) attributes {dimension_semantics = [#tpu.dimension_semantics<parallel>], iteration_bounds = array<i64: 1>, scalar_prefetch = 0 : i64, scratch_operands = 0 : i64, tpu.core_type = #tpu.core_type<tc>, window_params = [{transform_indices = @transform_0, window_bounds = array<i64: 8, 32>}, {pipeline_mode = #tpu.pipeline_mode<synchronous>, transform_indices = @transform_1, window_bounds = array<i64: 32, 64>}, {pipeline_mode = #tpu.pipeline_mode<synchronous>, transform_indices = @transform_2, window_bounds = array<i64: 1, 64>}, {pipeline_mode = #tpu.pipeline_mode<synchronous>, transform_indices = @transform_3, window_bounds = array<i64: 64, 64>}, {pipeline_mode = #tpu.pipeline_mode<synchronous>, transform_indices = @transform_4, window_bounds = array<i64: 1, 64>}, {pipeline_mode = #tpu.pipeline_mode<synchronous>, transform_indices = @transform_5, window_bounds = array<i64: 64, 8>}, {pipeline_mode = #tpu.pipeline_mode<synchronous>, transform_indices = @transform_6, window_bounds = array<i64: 1, 8>}, {transform_indices = @transform_7, window_bounds = array<i64: 8, 8>}]} {
    %c0 = arith.constant 0 : index
    %c0_0 = arith.constant 0 : index
    %0 = vector.load %arg1[%c0, %c0_0] : memref<8x32xf32, #tpu.memory_space<vmem>>, vector<8x32xf32>
    %c0_1 = arith.constant 0 : index
    %c0_2 = arith.constant 0 : index
    %1 = vector.load %arg2[%c0_1, %c0_2] : memref<32x64xf32, #tpu.memory_space<vmem>>, vector<32x64xf32>
    %cst = arith.constant dense<0.000000e+00> : vector<8x64xf32>
    %2 = tpu.matmul %0, %1, %cst {dimension_numbers = #tpu.dot_dimension_numbers<[1], [0], [0], [1], [0, 0, 1, 1], [], []>} : vector<8x32xf32>, vector<32x64xf32>, vector<8x64xf32> -> vector<8x64xf32>
    %c0_3 = arith.constant 0 : index
    %c0_4 = arith.constant 0 : index
    %3 = vector.load %arg3[%c0_3, %c0_4] : memref<1x64xf32, #tpu.memory_space<vmem>>, vector<1x64xf32>
    %4 = vector.broadcast %3 : vector<1x64xf32> to vector<8x64xf32>
    %5 = arith.addf %2, %4 : vector<8x64xf32>
    %cst_5 = arith.constant 0.000000e+00 : f32
    %6 = vector.broadcast %cst_5 : f32 to vector<8x64xf32>
    %7 = arith.maximumf %5, %6 : vector<8x64xf32>
    %c0_6 = arith.constant 0 : index
    %c0_7 = arith.constant 0 : index
    %8 = vector.load %arg4[%c0_6, %c0_7] : memref<64x64xf32, #tpu.memory_space<vmem>>, vector<64x64xf32>
    %cst_8 = arith.constant dense<0.000000e+00> : vector<8x64xf32>
    %9 = tpu.matmul %7, %8, %cst_8 {dimension_numbers = #tpu.dot_dimension_numbers<[1], [0], [0], [1], [0, 0, 1, 1], [], []>} : vector<8x64xf32>, vector<64x64xf32>, vector<8x64xf32> -> vector<8x64xf32>
    %c0_9 = arith.constant 0 : index
    %c0_10 = arith.constant 0 : index
    %10 = vector.load %arg5[%c0_9, %c0_10] : memref<1x64xf32, #tpu.memory_space<vmem>>, vector<1x64xf32>
    %11 = vector.broadcast %10 : vector<1x64xf32> to vector<8x64xf32>
    %12 = arith.addf %9, %11 : vector<8x64xf32>
    %cst_11 = arith.constant 0.000000e+00 : f32
    %13 = vector.broadcast %cst_11 : f32 to vector<8x64xf32>
    %14 = arith.maximumf %12, %13 : vector<8x64xf32>
    %c0_12 = arith.constant 0 : index
    %c0_13 = arith.constant 0 : index
    %15 = vector.load %arg6[%c0_12, %c0_13] : memref<64x8xf32, #tpu.memory_space<vmem>>, vector<64x8xf32>
    %cst_14 = arith.constant dense<0.000000e+00> : vector<8x8xf32>
    %16 = tpu.matmul %14, %15, %cst_14 {dimension_numbers = #tpu.dot_dimension_numbers<[1], [0], [0], [1], [0, 0, 1, 1], [], []>} : vector<8x64xf32>, vector<64x8xf32>, vector<8x8xf32> -> vector<8x8xf32>
    %c0_15 = arith.constant 0 : index
    %c0_16 = arith.constant 0 : index
    %17 = vector.load %arg7[%c0_15, %c0_16] : memref<1x8xf32, #tpu.memory_space<vmem>>, vector<1x8xf32>
    %18 = vector.broadcast %17 : vector<1x8xf32> to vector<8x8xf32>
    %19 = arith.addf %16, %18 : vector<8x8xf32>
    %20 = tpu.iota {dimensions = array<i32: 1>} : vector<8x8xi32>
    %c6_i32 = arith.constant 6 : i32
    %21 = vector.broadcast %c6_i32 : i32 to vector<8x8xi32>
    %22 = arith.cmpi slt, %20, %21 : vector<8x8xi32>
    %cst_17 = arith.constant 0xFF800000 : f32
    %23 = vector.broadcast %cst_17 : f32 to vector<8x8xf32>
    %24 = arith.select %22, %19, %23 : vector<8x8xi1>, vector<8x8xf32>
    %cst_18 = arith.constant dense<0xFF800000> : vector<8xf32>
    %25 = vector.multi_reduction <maximumf>, %24, %cst_18 [1] : vector<8x8xf32> to vector<8xf32>
    %26 = vector.shape_cast %25 : vector<8xf32> to vector<8x1xf32>
    %27 = vector.broadcast %26 : vector<8x1xf32> to vector<8x8xf32>
    %28 = arith.subf %24, %27 : vector<8x8xf32>
    %29 = math.exp %28 : vector<8x8xf32>
    %cst_19 = arith.constant dense<0.000000e+00> : vector<8xf32>
    %30 = vector.multi_reduction <add>, %29, %cst_19 [1] : vector<8x8xf32> to vector<8xf32>
    %31 = vector.shape_cast %30 : vector<8xf32> to vector<8x1xf32>
    %32 = vector.broadcast %31 : vector<8x1xf32> to vector<8x8xf32>
    %33 = arith.divf %29, %32 : vector<8x8xf32>
    %34 = arith.select %22, %33, %19 : vector<8x8xi1>, vector<8x8xf32>
    %c0_20 = arith.constant 0 : index
    %c0_21 = arith.constant 0 : index
    %35 = vector.load %arg8[%c0_20, %c0_21] : memref<8x8xf32, #tpu.memory_space<vmem>>, vector<8x8xf32>
    tpu.vector_store %arg8[%c0_20, %c0_21], %34 {strides = array<i32>} : memref<8x8xf32, #tpu.memory_space<vmem>>, vector<8x8xf32>,
    return
  }
  func.func @transform_0(%arg0: i32) -> (i32, i32) {
    %c0_i32 = arith.constant 0 : i32
    %c0_i32_0 = arith.constant 0 : i32
    return %arg0, %c0_i32 : i32, i32
  }
  func.func @transform_1(%arg0: i32) -> (i32, i32) {
    %c0_i32 = arith.constant 0 : i32
    %c0_i32_0 = arith.constant 0 : i32
    %c0_i32_1 = arith.constant 0 : i32
    return %c0_i32, %c0_i32_0 : i32, i32
  }
  func.func @transform_2(%arg0: i32) -> (i32, i32) {
    %c0_i32 = arith.constant 0 : i32
    %c0_i32_0 = arith.constant 0 : i32
    %c0_i32_1 = arith.constant 0 : i32
    return %c0_i32, %c0_i32_0 : i32, i32
  }
  func.func @transform_3(%arg0: i32) -> (i32, i32) {
    %c0_i32 = arith.constant 0 : i32
    %c0_i32_0 = arith.constant 0 : i32
    %c0_i32_1 = arith.constant 0 : i32
    return %c0_i32, %c0_i32_0 : i32, i32
  }
  func.func @transform_4(%arg0: i32) -> (i32, i32) {
    %c0_i32 = arith.constant 0 : i32
    %c0_i32_0 = arith.constant 0 : i32
    %c0_i32_1 = arith.constant 0 : i32
    return %c0_i32, %c0_i32_0 : i32, i32
  }
  func.func @transform_5(%arg0: i32) -> (i32, i32) {
    %c0_i32 = arith.constant 0 : i32
    %c0_i32_0 = arith.constant 0 : i32
    %c0_i32_1 = arith.constant 0 : i32
    return %c0_i32, %c0_i32_0 : i32, i32
  }
  func.func @transform_6(%arg0: i32) -> (i32, i32) {
    %c0_i32 = arith.constant 0 : i32
    %c0_i32_0 = arith.constant 0 : i32
    %c0_i32_1 = arith.constant 0 : i32
    return %c0_i32, %c0_i32_0 : i32, i32
  }
  func.func @transform_7(%arg0: i32) -> (i32, i32) {
    %c0_i32 = arith.constant 0 : i32
    %c0_i32_0 = arith.constant 0 : i32
    return %arg0, %c0_i32 : i32, i32
  }
}

</mosaic_0001>

<bundles_post_ra>
// kernel: tpu_custom_call.1
= control target key start
LH: loop header
LB: loop body
LE: loop exit
PB: predicated region body
PF: predicated region fallthrough
CT: control target
= control target key end

     0   :  { %12 = vsyncpa [#allocation3], 0  ;;  %s645_s0 = inlined_call_operand.vmem [shape: f32[8,32], index: 0, kind: input, shape index: {}]   ;;  %s646_s1 = inlined_call_operand.hbm [shape: f32[32,64], index: 1, kind: input, shape index: {}]   ;;  %s647_s2 = inlined_call_operand.vmem [shape: f32[1,64], index: 2, kind: input, shape index: {}]   ;;  %s648_s3 = inlined_call_operand.vmem [shape: f32[64,64], index: 3, kind: input, shape index: {}]   ;;  %s649_s4 = inlined_call_operand.vmem [shape: f32[1,64], index: 4, kind: input, shape index: {}]   ;;  %s650_s5 = inlined_call_operand.vmem [shape: f32[64,8], index: 5, kind: input, shape index: {}]   ;;  %s651_s6 = inlined_call_operand.vmem [shape: f32[1,8], index: 6, kind: input, shape index: {}]   ;;  %s652_s7 = inlined_call_operand.hbm [shape: f32[8,8], index: 7, kind: output, shape index: {}]  }
   0x1   :  { %13 = vsyncpa [#allocation4], 0  ;;  %s506_s24 = smov [#allocation2]   ;;  %s458_s28 = scalar_lea.hbm %s646_s1, 512 }
   0x2   :  { %s21_s25 = sshll.u32 %s506_s24, 4  ;;  %p459_p0 = scmp.ne.s32.totalorder %s646_s1, %s458_s28  ;;  %s22_s25 = int_to_ptr.vmem [resolvable:$true] %s21_s25 }
   0x3   :  { %p462_p1 = scmp.lt.u32.totalorder %s458_s28, %s646_s1 }
   0x5   :  { %p464_p2 = pnand %p462_p1, %p459_p0 }
   0x7   :  { %467 = shalt.err (!%p464_p2)
}
   0x8   :  { %s468_s10 = scalar_lea.vmem %s22_s25, 512  ;;  %p473_p4 = scmp.lt.s32.totalorder %s22_s25, %s22_s25 }
   0x9   :  { %p469_p3 = scmp.ne.s32.totalorder %s22_s25, %s468_s10  ;;  %p474_p5 = scmp.lt.s32.totalorder %s468_s10, %s468_s10 }
   0xb   :  { %p475_p6 = por %p474_p5, %p473_p4 }
   0xd   :  { %p476_p7 = pnand %p475_p6, %p469_p3 }
   0xf   :  { %479 = shalt.err (!%p476_p7)
}
  0x10   :  { %s507_s11 = smov 128   ;;  %s508_s12 = smov 8  }
  0x11   :  { %27 = dma.hbm_to_vmem [thread:$0]  %s646_s1, 512, %s22_s25, [#allocation3], %s507_s11, %s507_s11, %s508_s12  }
  0x12   :  { %502 = dma.done.wait [#allocation3], 512  }
  0x13   :  { %503 = vsyncadd [#allocation3], 4294966784  ;;  %v509_v0 = vmov 0.0|0.0   ;;  %vm510_vm0 = vmmov 0   ;;  %v511_v1 = vmov 0.0   ;;  %v42_v2 = vld [vmem:[#allocation2] sm:$0xff]  ;;  %v306_v43 = vlaneseq }
  0x14   :  { %417 = vmatprep.subr.bf16.mxu0 %v509_v0  ;;  %376 = vmatprep.mubr.msk.f32.mxu0 %vm510_vm0, %v511_v1  ;;  %v43_v3 = vld [vmem:[#allocation2 + $0x8] sm:$0xff]  ;;  %v44_v4 = vld [vmem:[#allocation2 + $0x10] sm:$0xff]  ;;  %v45_v6 = vld [vmem:[#allocation2 + $0x18] sm:$0xff]  ;;  %vm53_vm1 = vcmask 261120   ;;  %vm143_vm2 = vcmask 523264   ;;  %vm310_vm4 = vcmask 64512  }
  0x15   :  { %423 = vmatprep.subr.bf16.mxu1 %v509_v0  ;;  %395 = vmatprep.mubr.msk.f32.mxu1 %vm510_vm0, %v511_v1  ;;  %v418_v5 = vpack.c.bf16 %v43_v3, %v42_v2  ;;  %v128_v7 = vld [vmem:[%s648_s3] sm:$0xff]  ;;  %v129_v8 = vld [vmem:[%s648_s3 + $0x8] sm:$0xff]  ;;  %v130_v9 = vld [vmem:[%s648_s3 + $0x10] sm:$0xff]  ;;  %v421_v11 = vpack.c.bf16 %v45_v6, %v44_v4  ;;  %v307_v44 = vand.u32 127, %v306_v43 }
  0x16   :  { %v131_v10 = vld [vmem:[%s648_s3 + $0x18] sm:$0xff]  ;;  %v424_v12 = vpack.c.bf16 %v129_v8, %v128_v7  ;;  %v132_v14 = vld [vmem:[%s648_s3 + $0x20] sm:$0xff]  ;;  %v133_v15 = vld [vmem:[%s648_s3 + $0x28] sm:$0xff] }
  0x17   :  { %419 = vmatpush3.bf16.msra.mxu0 %v418_v5  ;;  %v427_v13 = vpack.c.bf16 %v131_v10, %v130_v9  ;;  %v41_v16 = vld [vmem:[%s645_s0] sm:$0xff]  ;;  %v430_v17 = vpack.c.bf16 %v133_v15, %v132_v14  ;;  %v134_v18 = vld [vmem:[%s648_s3 + $0x30] sm:$0xff]  ;;  %v135_v19 = vld [vmem:[%s648_s3 + $0x38] sm:$0xff]  ;;  %vm308_vm3 = vcmp.lt.s32.totalorder %v307_v44, 6 }
  0x18   :  { %420 = vmatprep.subr.bf16.mxu0 %v509_v0  ;;  %425 = vmatpush3.bf16.msra.mxu1 %v424_v12  ;;  %v433_v20 = vpack.c.bf16 %v135_v19, %v134_v18  ;;  %v218_v21 = vld [vmem:[%s650_s5] sm:$0xff]  ;;  %v219_v22 = vld [vmem:[%s650_s5 + $0x8] sm:$0xff]  ;;  %v220_v23 = vld [vmem:[%s650_s5 + $0x10] sm:$0xff] }
  0x19   :  { %426 = vmatprep.subr.bf16.mxu1 %v509_v0  ;;  %v436_v24 = vpack.c.bf16 %v219_v22, %v218_v21  ;;  %v221_v25 = vld [vmem:[%s650_s5 + $0x18] sm:$0xff]  ;;  %v222_v27 = vld [vmem:[%s650_s5 + $0x20] sm:$0xff]  ;;  %v223_v28 = vld [vmem:[%s650_s5 + $0x28] sm:$0xff] }
  0x1a   :  { %v439_v26 = vpack.c.bf16 %v221_v25, %v220_v23  ;;  %v442_v29 = vpack.c.bf16 %v223_v28, %v222_v27  ;;  %v339_v30 = vld [vmem:[%s647_s2] ss:$0 sm:$0xff]  ;;  %v224_v35 = vld [vmem:[%s650_s5 + $0x30] sm:$0xff]  ;;  %v225_v36 = vld [vmem:[%s650_s5 + $0x38] sm:$0xff] }
  0x1b   :  { %422 = vmatpush3.bf16.msra.mxu0 %v421_v11  ;;  %v445_v37 = vpack.c.bf16 %v225_v36, %v224_v35  ;;  %v341_v38 = vld [vmem:[%s649_s4] ss:$0 sm:$0xff]  ;;  %s512_s4 = smov [#allocation5]  }
  0x1c   :  { %435 = vmatprep.subr.bf16.mxu0 %v509_v0  ;;  %428 = vmatpush3.bf16.msra.mxu1 %v427_v13  ;;  %v343_v45 = vld [vmem:[%s651_s6] ss:$0 sm:$0xff]  ;;  %s330_s5 = sshll.u32 %s512_s4, 4  ;;  %s331_s5 = int_to_ptr.vmem [resolvable:$true] %s330_s5 }
  0x1d   :  { %429 = vmatprep.subr.bf16.mxu1 %v509_v0  ;;  %s480_s6 = scalar_lea.vmem %s331_s5, 128  ;;  %p485_p9 = scmp.lt.s32.totalorder %s331_s5, %s331_s5 }
  0x1e   :  { %377 = vmatmul.mubr.msk.f32.vlgmr.msra.gmra.mrb[0].mxu0 %vm53_vm1, %v41_v16  ;;  %p481_p8 = scmp.ne.s32.totalorder %s331_s5, %s480_s6  ;;  %p486_p10 = scmp.lt.s32.totalorder %s480_s6, %s480_s6 }
  0x1f   :  { %414 = vmatprep.mubr.msk.f32.mxu0 %vm510_vm0, %v511_v1  ;;  %437 = vmatpush3.bf16.msra.mxu0 %v436_v24 }
  0x20   :  { %431 = vmatpush3.bf16.msra.mxu1 %v430_v17  ;;  %438 = vmatprep.subr.bf16.mxu0 %v509_v0  ;;  %p487_p11 = por %p486_p10, %p485_p9 }
  0x21   :  { %432 = vmatprep.subr.bf16.mxu1 %v509_v0 }
  0x22   :  { %p488_p12 = pnand %p487_p11, %p481_p8 }
  0x23   :  { %440 = vmatpush3.bf16.msra.mxu0 %v439_v26 }
  0x24   :  { %434 = vmatpush3.bf16.msra.mxu1 %v433_v20  ;;  %441 = vmatprep.subr.bf16.mxu0 %v509_v0 }
  0x27   :  { %443 = vmatpush3.bf16.msra.mxu0 %v442_v29 }
  0x28   :  { %444 = vmatprep.subr.bf16.mxu0 %v509_v0 }
  0x2b   :  { %446 = vmatpush3.bf16.msra.mxu0 %v445_v37 }
  0xf1   :  { %v123_v31 = vpop.f32.mrb[0].mxu0 }
  0xf2   :  { %v124_v32 = vadd.f32 %v339_v30, %v123_v31  ;;  %v378_v33 = vpop.f32.mrb[1].mxu0 }
  0xf4   :  { %v127_v34 = vmax.f32 %v124_v32, 0.0 }
  0xf6   :  { %396 = vmatmul.mubr.msk.f32.vlgmr.msra.gmra.mrb[0].mxu1 %vm143_vm2, %v127_v34 }
 0x1c9   :  { %v213_v39 = vpop.f32.mrb[0].mxu1 }
 0x1ca   :  { %v214_v40 = vadd.f32 %v341_v38, %v213_v39  ;;  %v397_v41 = vpop.f32.mrb[1].mxu1 }
 0x1cc   :  { %v217_v42 = vmax.f32 %v214_v40, 0.0 }
 0x1ce   :  { %415 = vmatmul.mubr.msk.f32.vlgmr.msra.gmra.mrb[2].mxu0 %vm143_vm2, %v217_v42 }
 0x2a1   :  { %v302_v46 = vpop.f32.mrb[2].mxu0 }
 0x2a2   :  { %v303_v47 = vadd.f32 %v343_v45, %v302_v46  ;;  %v416_v48 = vpop.f32.mrb[3].mxu0 }
 0x2a4   :  { %v309_v49 = vsel %vm308_vm3, %v303_v47, -inf }
 0x2a5   :  { %v311_v50 = vsel %vm310_vm4, %v309_v49, -inf }
 0x2a6   :  { %312 = vmax.xlane.f32.xlu0 %v311_v50 }
 0x333   :  { %v313_v51 = vpop.xlane.xlu0 %312 }
 0x334   :  { %v314_v52 = vsub.f32 %v309_v49, %v313_v51 }
 0x336   :  { %v315_v53 = vmul.f32 1.442695, %v314_v52 }
 0x338   :  { %454 = vpow2.f32 %v315_v53 }
 0x342   :  { %v455_v54 = vpop.eup %454 }
 0x343   :  { %v317_v55 = vsel %vm310_vm4, %v455_v54, 0.0 }
 0x344   :  { %318 = vadd.xlane.f32.xlu0 %v317_v55 }
 0x3d1   :  { %v319_v56 = vpop.xlane.xlu0 %318 }
 0x3d2   :  { %456 = vrcp.f32 %v319_v56 }
 0x3dc   :  { %v457_v57 = vpop.eup %456 }
 0x3dd   :  { %v321_v58 = vmul.f32 %v457_v57, %v455_v54 }
 0x3df   :  { %v322_v59 = vsel %vm308_vm3, %v321_v58, %v303_v47 }
 0x3e0   :  { %323 = vst.msk [vmem:[#allocation5] sm:$0xff] %vm310_vm4, %v322_v59 }
 0x3e1   :  { %491 = shalt.err (!%p488_p12)
}
 0x3e2   :  { %s492_s29 = scalar_lea.hbm %s652_s7, 128 }
 0x3e3   :  { %p493_p13 = scmp.ne.s32.totalorder %s652_s7, %s492_s29  ;;  %p496_p0 = scmp.lt.u32.totalorder %s492_s29, %s652_s7 }
 0x3e5   :  { %p498_p1 = pnand %p496_p0, %p493_p13 }
 0x3e7   :  { %501 = shalt.err (!%p498_p1)
}
 0x3e8   :  { %333 = dma.vmem_to_hbm [thread:$0]  %s331_s5, 128, %s652_s7, [#allocation4]  }
 0x3e9   :  { %504 = dma.done.wait [#allocation4], 128  }
 0x3ea   :  { %505 = vsyncadd [#allocation4], 4294967168 }
 0x3eb   :  { %337 = vsyncpa [#allocation3], 1 }
 0x3ec   :  { %338 = vsyncpa [#allocation4], 1 }

</bundles_post_ra>
